<compile_context>
chip_gen: v5e
topology: v5e:2x2
jax: 0.10.0
libtpu: 0.0.40
codegen_flags: <defaults>
</compile_context>

<pallas_src>
import jax
import jax.numpy as jnp
from jax.experimental import pallas as pl
from jax.experimental.pallas import tpu as pltpu


# ----------------------------- Pallas kernel -------------------------------
def _qcritic_fused_kernel(x_ref, w1_ref, b1_ref, w2_ref, b2_ref, w3_ref,
                          b3_ref, out_ref):
    """All critics evaluated on one batch tile, fully fused in VMEM.

    x_ref   : (B_t, D_in)   VMEM f32   concat([obs, act]) tile
    w1_ref  : (D_in, C*H)   VMEM bf16  layer-1 weights, critics stacked on N
    b1_ref  : (1, C*H)      VMEM f32
    w2_ref  : (C, H, H)     VMEM bf16
    b2_ref  : (C, 1, H)     VMEM f32
    w3_ref  : (C, 1, H)     VMEM f32   output weight as a row (VPU path)
    b3_ref  : (C, 1)        VMEM f32   output bias per critic
    out_ref : (C, B_t)      VMEM f32   lane-dense (batch on lanes)
    """
    n_critics, hidden, _ = w2_ref.shape

    # ---- Layer 1, all critics in one MXU pass (bf16 in, f32 accumulate) ---
    x16 = x_ref[...].astype(jnp.bfloat16)                       # cast once
    h1_all = jnp.dot(x16, w1_ref[...],
                     preferred_element_type=jnp.float32)        # (B_t, C*H)
    h1_all = jnp.maximum(h1_all + b1_ref[...], 0.0)             # f32 bias+ReLU
    h1_all16 = h1_all.astype(jnp.bfloat16)                      # cast once

    # ---- Per-critic layers 2 & 3 (static unroll; C is small) -------------
    # TODO(synk): if num_critics grows beyond ~4, switch to lax.fori_loop (or
    # a grid axis over critics) to bound live ranges / VMEM pressure.
    q_rows = []
    for c in range(n_critics):
        h1_c = h1_all16[:, c * hidden:(c + 1) * hidden]         # static slice
        h2 = jnp.dot(h1_c, w2_ref[c],
                     preferred_element_type=jnp.float32)        # MXU bf16
        h2 = jnp.maximum(h2 + b2_ref[c], 0.0)                   # f32
        # Output Linear(H, 1) as VPU multiply + lane reduction (no N=1 MXU
        # pass); everything stays f32.
        q_rows.append(jnp.sum(h2 * w3_ref[c], axis=-1))         # (B_t,)

    # One coalesced, unmasked (C, B_t) store instead of C masked row writes.
    q = jnp.stack(q_rows, axis=0) + b3_ref[...]                 # (C, B_t)
    out_ref[...] = q.astype(out_ref.dtype)


# ------------------------------- Wrapper ------------------------------------
def qcritic_forward(obs, act, params, *, batch_tile=512):
    """Stacked Q-critic MLPs on (obs, act).

    Args:
      obs:    (B, obs_dim) float
      act:    (B, act_dim) float
      params: dict of stacked per-critic params (leading dim = num_critics):
              w1 (C, D_in, H), b1 (C, 1, H), w2 (C, H, H), b2 (C, 1, H),
              w3 (C, 1, H), b3 (C,)
    Returns:
      (num_critics, B) float32 -- Q value per critic per sample.  NOTE: this
      is the transpose of omnisafe's list-of-(B,) convention; transpose at
      the caller boundary if needed.
    """
    obs = obs.astype(jnp.float32)
    act = act.astype(jnp.float32)
    x = jnp.concatenate([obs, act], axis=-1)                    # (B, D_in)

    w1, b1 = params["w1"], params["b1"]
    w2, b2 = params["w2"], params["b2"]
    w3, b3 = params["w3"], params["b3"]

    n_critics, d_in, hidden = w1.shape
    batch = x.shape[0]

    # Pack weights: critics stacked along layer-1 N; bf16 MXU operands.
    w1_all = jnp.transpose(w1, (1, 0, 2)).reshape(d_in, n_critics * hidden)
    w1_all = w1_all.astype(jnp.bfloat16)
    b1_all = jnp.transpose(b1, (1, 0, 2)).reshape(1, n_critics * hidden)
    w2_16 = w2.astype(jnp.bfloat16)
    b3_col = b3.reshape(n_critics, 1).astype(jnp.float32)

    # ---- Batch tiling: single block for small batches, 512-row tiles else.
    if batch <= batch_tile:
        b_tile = batch
        n_blk = 1
        x_pad = x
    else:
        b_tile = batch_tile                                     # mult of 8 & 128
        n_blk = pl.cdiv(batch, b_tile)
        pad = n_blk * b_tile - batch
        x_pad = jnp.pad(x, ((0, pad), (0, 0))) if pad else x
    batch_pad = n_blk * b_tile

    flops = 2 * batch_pad * n_critics * (d_in * hidden + hidden * hidden
                                         + hidden)
    bytes_accessed = (x_pad.size * 4 + w1_all.size * 2 + b1_all.size * 4
                      + w2_16.size * 2 + b2.size * 4 + w3.size * 4
                      + b3_col.size * 4 + n_critics * batch_pad * 4)

    def resident(shape):
        # Weight block: full array, same block for every grid step -> stays
        # VMEM-resident, no re-DMA across batch tiles.
        ndim = len(shape)
        return pl.BlockSpec(shape, lambda i, _n=ndim: (0,) * _n)

    out = pl.pallas_call(
        _qcritic_fused_kernel,
        out_shape=jax.ShapeDtypeStruct((n_critics, batch_pad), jnp.float32),
        grid=(n_blk,),
        in_specs=[
            pl.BlockSpec((b_tile, d_in), lambda i: (i, 0)),     # x: batch-tiled
            resident((d_in, n_critics * hidden)),               # w1_all
            resident((1, n_critics * hidden)),                  # b1_all
            resident((n_critics, hidden, hidden)),              # w2
            resident((n_critics, 1, hidden)),                   # b2
            resident((n_critics, 1, hidden)),                   # w3
            resident((n_critics, 1)),                           # b3
        ],
        out_specs=pl.BlockSpec((n_critics, b_tile), lambda i: (0, i)),
        compiler_params=pltpu.CompilerParams(
            dimension_semantics=("parallel",)),
        cost_estimate=pl.CostEstimate(
            flops=flops, transcendentals=0, bytes_accessed=bytes_accessed),
    )(x_pad, w1_all, b1_all, w2_16, b2, w3, b3_col)

    return out[:, :batch] if batch_pad != batch else out


def actor_q_critic_forward(obs, act, params):
    """ActorQCritic.forward(obs, act): value of the state-action pair."""
    return qcritic_forward(obs, act, params)


# ------------------------------ Param init ---------------------------------
def _torch_linear_uniform(key, fan_in, shape, dtype=jnp.float32):
    # Matches PyTorch nn.Linear default init: bound = 1/sqrt(fan_in) for both
    # weight and bias.  Synthetic init only -- trained omnisafe checkpoints
    # must be loaded, not re-initialized.
    bound = 1.0 / jnp.sqrt(jnp.asarray(fan_in, dtype))
    return jax.random.uniform(key, shape, dtype, minval=-bound, maxval=bound)


def init_qcritic_params(key, obs_dim, act_dim, hidden, num_critics):
    d_in = obs_dim + act_dim
    keys = jax.random.split(key, 6)
    return dict(
        w1=_torch_linear_uniform(keys[0], d_in, (num_critics, d_in, hidden)),
        b1=_torch_linear_uniform(keys[1], d_in, (num_critics, 1, hidden)),
        w2=_torch_linear_uniform(keys[2], hidden, (num_critics, hidden, hidden)),
        b2=_torch_linear_uniform(keys[3], hidden, (num_critics, 1, hidden)),
        w3=_torch_linear_uniform(keys[4], hidden, (num_critics, 1, hidden)),
        b3=_torch_linear_uniform(keys[5], hidden, (num_critics,)),
    )


# ------------------------------ References ---------------------------------
def _reference_forward_f32(obs, act, params):
    """Pure-f32 JAX reference of the same MLP."""
    x = jnp.concatenate([obs.astype(jnp.float32), act.astype(jnp.float32)], -1)
    outs = []
    for c in range(params["w2"].shape[0]):
        h1 = jnp.maximum(x @ params["w1"][c] + params["b1"][c], 0.0)
        h2 = jnp.maximum(h1 @ params["w2"][c] + params["b2"][c], 0.0)
        outs.append(jnp.sum(h2 * params["w3"][c], -1) + params["b3"][c])
    return jnp.stack(outs, axis=0)


def _reference_forward_bf16(obs, act, params):
    """Reference with the same bf16-operand / f32-accumulate matmuls."""
    x = jnp.concatenate([obs.astype(jnp.float32), act.astype(jnp.float32)], -1)
    x16 = x.astype(jnp.bfloat16)
    outs = []
    for c in range(params["w2"].shape[0]):
        h1 = jnp.dot(x16, params["w1"][c].astype(jnp.bfloat16),
                     preferred_element_type=jnp.float32)
        h1 = jnp.maximum(h1 + params["b1"][c], 0.0)
        h2 = jnp.dot(h1.astype(jnp.bfloat16),
                     params["w2"][c].astype(jnp.bfloat16),
                     preferred_element_type=jnp.float32)
        h2 = jnp.maximum(h2 + params["b2"][c], 0.0)
        outs.append(jnp.sum(h2 * params["w3"][c], -1) + params["b3"][c])
    return jnp.stack(outs, axis=0)


# TODO(synk): the actor branch (Gaussian/Cholesky actor sampling in
# ActorQCritic.step) is RNG-driven action sampling and not part of
# forward(obs, act); only the critic hot path is kernelized.

if __name__ == "__main__":
    key = jax.random.PRNGKey(0)
    k_obs, k_act, k_par = jax.random.split(key, 3)

    BATCH = 8
    OBS_DIM = 16
    ACT_DIM = 4
    HIDDEN = 32
    NUM_CRITICS = 2

    obs = jax.random.normal(k_obs, (BATCH, OBS_DIM), dtype=jnp.float32)
    act = jax.random.normal(k_act, (BATCH, ACT_DIM), dtype=jnp.float32)
    params = init_qcritic_params(k_par, OBS_DIM, ACT_DIM, HIDDEN, NUM_CRITICS)

    q_vals = actor_q_critic_forward(obs, act, params)
    q_vals = jax.block_until_ready(q_vals)
    assert q_vals.shape == (NUM_CRITICS, BATCH)

    # Exact-path check (same bf16-operand matmuls) and loose f32 check.
    q_ref16 = _reference_forward_bf16(obs, act, params)
    q_ref32 = _reference_forward_f32(obs, act, params)
    assert jnp.allclose(q_vals, q_ref16, atol=1e-3, rtol=1e-3), (
        jnp.max(jnp.abs(q_vals - q_ref16)))
    assert jnp.allclose(q_vals, q_ref32, atol=5e-2, rtol=5e-2), (
        jnp.max(jnp.abs(q_vals - q_ref32)))

    print("KERNEL_OK")
</pallas_src>

<mosaic_0001>
module attributes {stable_mosaic.version = 11 : i64} {
  func.func @_qcritic_fused_kernel(%arg0: i32, %arg1: memref<8x20xf32, #tpu.memory_space<vmem>>, %arg2: memref<20x64xbf16, #tpu.memory_space<vmem>>, %arg3: memref<1x64xf32, #tpu.memory_space<vmem>>, %arg4: memref<2x32x32xbf16, #tpu.memory_space<vmem>>, %arg5: memref<2x1x32xf32, #tpu.memory_space<vmem>>, %arg6: memref<2x1x32xf32, #tpu.memory_space<vmem>>, %arg7: memref<2x1xf32, #tpu.memory_space<vmem>>, %arg8: memref<2x8xf32, #tpu.memory_space<vmem>>) attributes {dimension_semantics = [#tpu.dimension_semantics<parallel>], iteration_bounds = array<i64: 1>, scalar_prefetch = 0 : i64, scratch_operands = 0 : i64, tpu.core_type = #tpu.core_type<tc>, window_params = [{transform_indices = @transform_0, window_bounds = array<i64: 8, 20>}, {pipeline_mode = #tpu.pipeline_mode<synchronous>, transform_indices = @transform_1, window_bounds = array<i64: 20, 64>}, {pipeline_mode = #tpu.pipeline_mode<synchronous>, transform_indices = @transform_2, window_bounds = array<i64: 1, 64>}, {pipeline_mode = #tpu.pipeline_mode<synchronous>, transform_indices = @transform_3, window_bounds = array<i64: 2, 32, 32>}, {pipeline_mode = #tpu.pipeline_mode<synchronous>, transform_indices = @transform_4, window_bounds = array<i64: 2, 1, 32>}, {pipeline_mode = #tpu.pipeline_mode<synchronous>, transform_indices = @transform_5, window_bounds = array<i64: 2, 1, 32>}, {pipeline_mode = #tpu.pipeline_mode<synchronous>, transform_indices = @transform_6, window_bounds = array<i64: 2, 1>}, {transform_indices = @transform_7, window_bounds = array<i64: 2, 8>}]} {
    %c0 = arith.constant 0 : index
    %c0_0 = arith.constant 0 : index
    %0 = vector.load %arg1[%c0, %c0_0] : memref<8x20xf32, #tpu.memory_space<vmem>>, vector<8x20xf32>
    %1 = arith.truncf %0 : vector<8x20xf32> to vector<8x20xbf16>
    %c0_1 = arith.constant 0 : index
    %c0_2 = arith.constant 0 : index
    %2 = vector.load %arg2[%c0_1, %c0_2] : memref<20x64xbf16, #tpu.memory_space<vmem>>, vector<20x64xbf16>
    %cst = arith.constant dense<0.000000e+00> : vector<8x64xf32>
    %3 = tpu.matmul %1, %2, %cst {dimension_numbers = #tpu.dot_dimension_numbers<[1], [0], [0], [1], [0, 0, 1, 1], [], []>} : vector<8x20xbf16>, vector<20x64xbf16>, vector<8x64xf32> -> vector<8x64xf32>
    %c0_3 = arith.constant 0 : index
    %c0_4 = arith.constant 0 : index
    %4 = vector.load %arg3[%c0_3, %c0_4] : memref<1x64xf32, #tpu.memory_space<vmem>>, vector<1x64xf32>
    %5 = vector.broadcast %4 : vector<1x64xf32> to vector<8x64xf32>
    %6 = arith.addf %3, %5 : vector<8x64xf32>
    %cst_5 = arith.constant 0.000000e+00 : f32
    %7 = vector.broadcast %cst_5 : f32 to vector<8x64xf32>
    %8 = arith.maximumf %6, %7 : vector<8x64xf32>
    %9 = arith.truncf %8 : vector<8x64xf32> to vector<8x64xbf16>
    %10 = vector.extract_strided_slice %9 {offsets = [0, 0], sizes = [8, 32], strides = [1, 1]} : vector<8x64xbf16> to vector<8x32xbf16>
    %c0_6 = arith.constant 0 : index
    %c0_7 = arith.constant 0 : index
    %c0_8 = arith.constant 0 : index
    %11 = vector.load %arg4[%c0_6, %c0_7, %c0_8] : memref<2x32x32xbf16, #tpu.memory_space<vmem>>, vector<1x32x32xbf16>
    %12 = vector.shape_cast %11 : vector<1x32x32xbf16> to vector<32x32xbf16>
    %cst_9 = arith.constant dense<0.000000e+00> : vector<8x32xf32>
    %13 = tpu.matmul %10, %12, %cst_9 {dimension_numbers = #tpu.dot_dimension_numbers<[1], [0], [0], [1], [0, 0, 1, 1], [], []>} : vector<8x32xbf16>, vector<32x32xbf16>, vector<8x32xf32> -> vector<8x32xf32>
    %c0_10 = arith.constant 0 : index
    %c0_11 = arith.constant 0 : index
    %c0_12 = arith.constant 0 : index
    %14 = vector.load %arg5[%c0_10, %c0_11, %c0_12] : memref<2x1x32xf32, #tpu.memory_space<vmem>>, vector<1x1x32xf32>
    %15 = vector.shape_cast %14 : vector<1x1x32xf32> to vector<1x32xf32>
    %16 = vector.broadcast %15 : vector<1x32xf32> to vector<8x32xf32>
    %17 = arith.addf %13, %16 : vector<8x32xf32>
    %cst_13 = arith.constant 0.000000e+00 : f32
    %18 = vector.broadcast %cst_13 : f32 to vector<8x32xf32>
    %19 = arith.maximumf %17, %18 : vector<8x32xf32>
    %c0_14 = arith.constant 0 : index
    %c0_15 = arith.constant 0 : index
    %c0_16 = arith.constant 0 : index
    %20 = vector.load %arg6[%c0_14, %c0_15, %c0_16] : memref<2x1x32xf32, #tpu.memory_space<vmem>>, vector<1x1x32xf32>
    %21 = vector.shape_cast %20 : vector<1x1x32xf32> to vector<1x32xf32>
    %22 = vector.broadcast %21 : vector<1x32xf32> to vector<8x32xf32>
    %23 = arith.mulf %19, %22 : vector<8x32xf32>
    %cst_17 = arith.constant dense<0.000000e+00> : vector<8xf32>
    %24 = vector.multi_reduction <add>, %23, %cst_17 [1] : vector<8x32xf32> to vector<8xf32>
    %25 = vector.extract_strided_slice %9 {offsets = [0, 32], sizes = [8, 32], strides = [1, 1]} : vector<8x64xbf16> to vector<8x32xbf16>
    %c1 = arith.constant 1 : index
    %c0_18 = arith.constant 0 : index
    %c0_19 = arith.constant 0 : index
    %26 = vector.load %arg4[%c1, %c0_18, %c0_19] : memref<2x32x32xbf16, #tpu.memory_space<vmem>>, vector<1x32x32xbf16>
    %27 = vector.shape_cast %26 : vector<1x32x32xbf16> to vector<32x32xbf16>
    %cst_20 = arith.constant dense<0.000000e+00> : vector<8x32xf32>
    %28 = tpu.matmul %25, %27, %cst_20 {dimension_numbers = #tpu.dot_dimension_numbers<[1], [0], [0], [1], [0, 0, 1, 1], [], []>} : vector<8x32xbf16>, vector<32x32xbf16>, vector<8x32xf32> -> vector<8x32xf32>
    %c1_21 = arith.constant 1 : index
    %c0_22 = arith.constant 0 : index
    %c0_23 = arith.constant 0 : index
    %29 = vector.load %arg5[%c1_21, %c0_22, %c0_23] : memref<2x1x32xf32, #tpu.memory_space<vmem>>, vector<1x1x32xf32>
    %30 = vector.shape_cast %29 : vector<1x1x32xf32> to vector<1x32xf32>
    %31 = vector.broadcast %30 : vector<1x32xf32> to vector<8x32xf32>
    %32 = arith.addf %28, %31 : vector<8x32xf32>
    %cst_24 = arith.constant 0.000000e+00 : f32
    %33 = vector.broadcast %cst_24 : f32 to vector<8x32xf32>
    %34 = arith.maximumf %32, %33 : vector<8x32xf32>
    %c1_25 = arith.constant 1 : index
    %c0_26 = arith.constant 0 : index
    %c0_27 = arith.constant 0 : index
    %35 = vector.load %arg6[%c1_25, %c0_26, %c0_27] : memref<2x1x32xf32, #tpu.memory_space<vmem>>, vector<1x1x32xf32>
    %36 = vector.shape_cast %35 : vector<1x1x32xf32> to vector<1x32xf32>
    %37 = vector.broadcast %36 : vector<1x32xf32> to vector<8x32xf32>
    %38 = arith.mulf %34, %37 : vector<8x32xf32>
    %cst_28 = arith.constant dense<0.000000e+00> : vector<8xf32>
    %39 = vector.multi_reduction <add>, %38, %cst_28 [1] : vector<8x32xf32> to vector<8xf32>
    %40 = vector.shape_cast %24 : vector<8xf32> to vector<1x8xf32>
    %41 = vector.shape_cast %39 : vector<8xf32> to vector<1x8xf32>
    %42 = tpu.concatenate %40, %41 in 0 : vector<1x8xf32>, vector<1x8xf32> -> vector<2x8xf32>
    %c0_29 = arith.constant 0 : index
    %c0_30 = arith.constant 0 : index
    %43 = vector.load %arg7[%c0_29, %c0_30] : memref<2x1xf32, #tpu.memory_space<vmem>>, vector<2x1xf32>
    %44 = vector.broadcast %43 : vector<2x1xf32> to vector<2x8xf32>
    %45 = arith.addf %42, %44 : vector<2x8xf32>
    %c0_31 = arith.constant 0 : index
    %c0_32 = arith.constant 0 : index
    %46 = vector.load %arg8[%c0_31, %c0_32] : memref<2x8xf32, #tpu.memory_space<vmem>>, vector<2x8xf32>
    tpu.vector_store %arg8[%c0_31, %c0_32], %45 {strides = array<i32>} : memref<2x8xf32, #tpu.memory_space<vmem>>, vector<2x8xf32>,
    return
  }
  func.func @transform_0(%arg0: i32) -> (i32, i32) {
    %c0_i32 = arith.constant 0 : i32
    %c0_i32_0 = arith.constant 0 : i32
    return %arg0, %c0_i32 : i32, i32
  }
  func.func @transform_1(%arg0: i32) -> (i32, i32) {
    %c0_i32 = arith.constant 0 : i32
    %c0_i32_0 = arith.constant 0 : i32
    %c0_i32_1 = arith.constant 0 : i32
    return %c0_i32, %c0_i32_0 : i32, i32
  }
  func.func @transform_2(%arg0: i32) -> (i32, i32) {
    %c0_i32 = arith.constant 0 : i32
    %c0_i32_0 = arith.constant 0 : i32
    %c0_i32_1 = arith.constant 0 : i32
    return %c0_i32, %c0_i32_0 : i32, i32
  }
  func.func @transform_3(%arg0: i32) -> (i32, i32, i32) {
    %c0_i32 = arith.constant 0 : i32
    %c0_i32_0 = arith.constant 0 : i32
    %c0_i32_1 = arith.constant 0 : i32
    %c0_i32_2 = arith.constant 0 : i32
    return %c0_i32, %c0_i32_0, %c0_i32_1 : i32, i32, i32
  }
  func.func @transform_4(%arg0: i32) -> (i32, i32, i32) {
    %c0_i32 = arith.constant 0 : i32
    %c0_i32_0 = arith.constant 0 : i32
    %c0_i32_1 = arith.constant 0 : i32
    %c0_i32_2 = arith.constant 0 : i32
    return %c0_i32, %c0_i32_0, %c0_i32_1 : i32, i32, i32
  }
  func.func @transform_5(%arg0: i32) -> (i32, i32, i32) {
    %c0_i32 = arith.constant 0 : i32
    %c0_i32_0 = arith.constant 0 : i32
    %c0_i32_1 = arith.constant 0 : i32
    %c0_i32_2 = arith.constant 0 : i32
    return %c0_i32, %c0_i32_0, %c0_i32_1 : i32, i32, i32
  }
  func.func @transform_6(%arg0: i32) -> (i32, i32) {
    %c0_i32 = arith.constant 0 : i32
    %c0_i32_0 = arith.constant 0 : i32
    %c0_i32_1 = arith.constant 0 : i32
    return %c0_i32, %c0_i32_0 : i32, i32
  }
  func.func @transform_7(%arg0: i32) -> (i32, i32) {
    %c0_i32 = arith.constant 0 : i32
    %c0_i32_0 = arith.constant 0 : i32
    return %c0_i32, %arg0 : i32, i32
  }
}

</mosaic_0001>

<bundles_post_ra>
// kernel: tpu_custom_call.1
= control target key start
LH: loop header
LB: loop body
LE: loop exit
PB: predicated region body
PF: predicated region fallthrough
CT: control target
= control target key end

     0   :  { %12 = vsyncpa [#allocation3], 0  ;;  %s522_s0 = inlined_call_operand.hbm [shape: f32[8,20], index: 0, kind: input, shape index: {}]   ;;  %s523_s1 = inlined_call_operand.hbm [shape: bf16[20,64], index: 1, kind: input, shape index: {}]   ;;  %s524_s2 = inlined_call_operand.hbm [shape: f32[1,64], index: 2, kind: input, shape index: {}]   ;;  %s525_s3 = inlined_call_operand.hbm [shape: bf16[2,32,32], index: 3, kind: input, shape index: {}]   ;;  %s526_s4 = inlined_call_operand.vmem [shape: f32[2,1,32], index: 4, kind: input, shape index: {}]   ;;  %s527_s5 = inlined_call_operand.vmem [shape: f32[2,1,32], index: 5, kind: input, shape index: {}]   ;;  %s528_s6 = inlined_call_operand.vmem [shape: f32[2,1], index: 6, kind: input, shape index: {}]   ;;  %s529_s7 = inlined_call_operand.hbm [shape: f32[2,8], index: 7, kind: output, shape index: {}]  }
   0x1   :  { %13 = vsyncpa [#allocation6], 0 }
   0x2   :  { %14 = vsyncpa [#allocation9], 0  ;;  %s31_s26 = sshll.u32 %s523_s1, 4  ;;  %s32_s26 = int_to_ptr.hbm [resolvable:$true] %s31_s26 }
   0x3   :  { %15 = vsyncpa [#allocation4], 0  ;;  %s439_s27 = smov [#allocation5]   ;;  %s21_s8 = sshll.u32 %s522_s0, 4  ;;  %s22_s8 = int_to_ptr.hbm [resolvable:$true] %s21_s8 }
   0x4   :  { %s33_s28 = sshll.u32 %s439_s27, 4  ;;  %s440_s9 = smov 64   ;;  %s34_s28 = int_to_ptr.vmem [resolvable:$true] %s33_s28 }
   0x5   :  { %s441_s10 = smov 4   ;;  %s442_s11 = smov [#allocation2]  }
   0x6   :  { %39 = dma.hbm_to_vmem [thread:$0]  %s32_s26, 192, %s34_s28, [#allocation6], %s440_s9, %s440_s9, %s441_s10  }
   0x7   :  { %s23_s12 = sshll.u32 %s442_s11, 4  ;;  %s45_s15 = sshll.u32 %s524_s2, 4  ;;  %s24_s12 = int_to_ptr.vmem [resolvable:$true] %s23_s12  ;;  %s46_s15 = int_to_ptr.hbm [resolvable:$true] %s45_s15 }
   0x8   :  { %26 = dma.hbm_to_vmem [thread:$0]  %s22_s8, 128, %s24_s12, [#allocation3]  }
   0x9   :  { %s55_s17 = sshll.u32 %s525_s3, 4  ;;  %s443_s18 = smov [#allocation7]   ;;  %s56_s17 = int_to_ptr.hbm [resolvable:$true] %s55_s17 }
   0xa   :  { %s47_s19 = sshll.u32 %s443_s18, 4  ;;  %s444_s0 = smov [#allocation8]   ;;  %s48_s19 = int_to_ptr.vmem [resolvable:$true] %s47_s19 }
   0xb   :  { %50 = dma.hbm_to_vmem [thread:$0]  %s46_s15, 16, %s48_s19, [#allocation6]  }
   0xc   :  { %s57_s20 = sshll.u32 %s444_s0, 4  ;;  %s58_s20 = int_to_ptr.vmem [resolvable:$true] %s57_s20 }
   0xd   :  { %63 = dma.hbm_to_vmem [thread:$0]  %s56_s17, 512, %s58_s20, [#allocation9], %s440_s9, %s440_s9, %s441_s10  }
   0xe   :  { %431 = dma.done.wait [#allocation3], 128  }
   0xf   :  { %432 = vsyncadd [#allocation3], 4294967168 }
  0x10   :  { %433 = dma.done.wait [#allocation6], 208  }
  0x11   :  { %434 = vsyncadd [#allocation6], 4294967088 }
  0x12   :  { %435 = dma.done.wait [#allocation9], 512  }
  0x13   :  { %436 = vsyncadd [#allocation9], 4294966784  ;;  %v91_v0 = vld [vmem:[#allocation5 + $0x8] sm:$0x3]  ;;  %vm109_vm0 = vcmask 1041408   ;;  %v290_v4 = vld [vmem:[#allocation5] sm:$0xff]  ;;  %v228_v38 = vlaneseq }
  0x14   :  { %v101_v1 = vunpack.c.l.b16 %v91_v0  ;;  %v87_v5 = vld [vmem:[#allocation2] sm:$0xff]  ;;  %vm105_vm1 = vcmask 162816   ;;  %v291_v8 = vld [vmem:[#allocation8] sm:$0xff]  ;;  %v294_v9 = vld [vmem:[#allocation8 + $0x18] sm:$0xff]  ;;  %vm148_vm2 = vcmask 261120   ;;  %s445_s2 = smov 96  }
  0x15   :  { %v88_v6 = vpack.c.bf16 %v87_v5, %v87_v5  ;;  %v292_v7 = vld [vmem:[#allocation8 + $0x8] sm:$0xff]  ;;  %210 = vmatpush.bf16.msra.mxu2 %v294_v9  ;;  %v293_v10 = vld [vmem:[#allocation8 + $0x10] sm:$0xff]  ;;  %v306_v11 = vld [vmem:[#allocation7] ss:$0 sm:$0xff]  ;;  %v446_v28 = vmov 0   ;;  %v229_v40 = vand.u32 127, %v228_v38 }
  0x16   :  { %v103_v2 = vpack.c.b16 %v101_v1, %v101_v1  ;;  %158 = vmatpush.bf16.msra.mxu1 %v292_v7  ;;  %v307_v20 = vld [vmem:[%s526_s4] ss:$0 sm:$0xff]  ;;  %304 = vset.pattern.permute.xlu1 %v446_v28  ;;  %v309_v29 = vld [vmem:[%s526_s4 + $0x1] ss:$0 sm:$0xff]  ;;  %vm235_vm3 = vcmask 1040384   ;;  %s447_s4 = smov [#allocation10]  }
  0x17   :  { %v308_v23 = vld [vmem:[%s527_s5] ss:$0 sm:$0xff]  ;;  %305 = vset.pattern.permute.xlu0 %v446_v28  ;;  %v310_v32 = vld [vmem:[%s527_s5 + $0x1] ss:$0 sm:$0xff]  ;;  %s251_s5 = sshll.u32 %s447_s4, 4  ;;  %s253_s9 = sshll.u32 %s529_s7, 4  ;;  %s252_s5 = int_to_ptr.vmem [resolvable:$true] %s251_s5  ;;  %s254_s9 = int_to_ptr.hbm [resolvable:$true] %s253_s9 }
  0x18   :  { %v111_v3 = vsel %vm109_vm0, %v103_v2, 0  ;;  %v237_v37 = vld [vmem:[%s528_s6] sm:$0x3]  ;;  %vm244_vm4 = vcmask 58368  }
  0x19   :  { %119 = vmatpush.bf16.msra.mxu0 %v111_v3  ;;  %211 = vmatpush.bf16.msra.mxu2 %v293_v10 }
  0x1a   :  { %159 = vmatpush.bf16.msra.mxu1 %v291_v8 }
  0x1d   :  { %120 = vmatpush.bf16.msra.mxu0 %v290_v4 }
  0x20   :  { %269 = vmatmul.msk.bf16.vlgmr.msra.gmra.mxu0 %vm105_vm1, %v88_v6 }
  0x9d   :  { %v122_v12 = vpop.f32.mrf.mxu0 }
  0x9e   :  { %v123_v13 = vadd.f32 %v306_v11, %v122_v12 }
  0xa0   :  { %v126_v14 = vmax.f32 %v123_v13, 0.0 }
  0xa2   :  { %v127_v15 = vpack.c.bf16 %v126_v14, %v126_v14 }
  0xa4   :  { %278 = vmatmul.msk.bf16.vlgmr.msra.gmra.mxu1 %vm148_vm2, %v127_v15  ;;  %v185_v16 = vunpack.c.l.b16 %v127_v15 }
  0xa5   :  { %v124_v17 = vpop.f32.mrf.mxu0 }
  0xa6   :  { %v186_v18 = vpack.c.b16 %v185_v16, %v185_v16 }
  0xa8   :  { %187 = vrot.lane.b32.xlu0 %v186_v18, %s445_s2 }
 0x11a   :  { %v188_v19 = vpop.permute.xlu0 %187 }
 0x11b   :  { %288 = vmatmul.msk.bf16.vlgmr.msra.gmra.mxu2 %vm148_vm2, %v188_v19 }
 0x121   :  { %v161_v21 = vpop.f32.mrf.mxu1 }
 0x122   :  { %v162_v22 = vadd.f32 %v307_v20, %v161_v21 }
 0x124   :  { %v165_v24 = vmax.f32 %v162_v22, 0.0 }
 0x126   :  { %v170_v25 = vmul.f32 %v308_v23, %v165_v24 }
 0x128   :  { %v171_v26 = vsel %vm148_vm2, %v170_v25, 0.0 }
 0x129   :  { %v163_v27 = vpop.f32.mrf.mxu1  ;;  %172 = vadd.xlane.f32.xlu0 %v171_v26 }
 0x19c   :  { %v173_v41 = vpop.xlane.xlu0 %172 }
 0x19d   :  { %v230_v43 = vperm.slane %v173_v41, %v229_v40 }
 0x19e   :  { %v213_v30 = vpop.f32.mrf.mxu2 }
 0x19f   :  { %v214_v31 = vadd.f32 %v309_v29, %v213_v30 }
 0x1a1   :  { %v217_v33 = vmax.f32 %v214_v31, 0.0 }
 0x1a3   :  { %v223_v34 = vmul.f32 %v310_v32, %v217_v33 }
 0x1a5   :  { %v224_v35 = vsel %vm148_vm2, %v223_v34, 0.0 }
 0x1a6   :  { %v215_v36 = vpop.f32.mrf.mxu2  ;;  %225 = vadd.xlane.f32.xlu1 %v224_v35 }
 0x1bf   :  { %240 = vperm.xlu1 %304, %v237_v37  }
 0x219   :  { %v226_v39 = vpop.xlane.xlu1 %225 }
 0x21a   :  { %v233_v42 = vperm.slane %v226_v39, %v229_v40 }
 0x21c   :  { %v236_v45 = vsel %vm235_vm3, %v230_v43, %v233_v42 }
 0x231   :  { %v241_v44 = vpop.permute.xlu1 %240 }
 0x232   :  { %v243_v46 = vadd.f32 %v241_v44, %v236_v45 }
 0x234   :  { %245 = vst.msk [vmem:[#allocation10] sm:$0x3] %vm244_vm4, %v243_v46 }
 0x235   :  { %256 = dma.vmem_to_hbm [thread:$0]  %s252_s5, 32, %s254_s9, [#allocation4]  }
 0x236   :  { %437 = dma.done.wait [#allocation4], 32  }
 0x237   :  { %438 = vsyncadd [#allocation4], 4294967264 }
 0x238   :  { %261 = vsyncpa [#allocation3], 1 }
 0x239   :  { %262 = vsyncpa [#allocation6], 1 }
 0x23a   :  { %263 = vsyncpa [#allocation9], 1 }
 0x23b   :  { %264 = vsyncpa [#allocation4], 1 }

</bundles_post_ra>
